<compile_context>
chip_gen: v7x
topology: tpu7x:2x2x1
jax: 0.10.0
libtpu: 0.0.40
codegen_flags: <defaults>
</compile_context>

<pallas_src>
import functools

import jax
import jax.numpy as jnp
from jax import lax
from jax.experimental import pallas as pl
from jax.experimental.pallas import tpu as pltpu


def _reorder_ifgo_to_ifog(w):
    """Reorder the leading 4H axis from torch's (i, f, g, o) to (i, f, o, g)."""
    H = w.shape[0] // 4
    return jnp.concatenate([w[: 2 * H], w[3 * H: 4 * H], w[2 * H: 3 * H]], axis=0)


def _lstm_block_kernel(xproj_ref,        # (T_BLK, B, 4H) precomputed input projection
                       h0_ref, c0_ref,   # (B, H) initial hidden / cell
                       whh_ref,          # (H, 4H) W_hh^T (gates reordered i,f,o,g), resident
                       out_ref,          # (T_BLK, B, H) per-step hidden outputs
                       hn_ref, cn_ref,   # (B, H) final hidden / cell
                       h_sc, c_sc,       # (B, H) VMEM scratch carrying state across blocks
                       *, t_blk, seq_len, hidden):
    g = pl.program_id(0)

    @pl.when(g == 0)
    def _init():
        h_sc[...] = h0_ref[...]
        c_sc[...] = c0_ref[...]

    H = hidden
    whh = whh_ref[...]                                   # stays in vregs/VMEM for the block
    needs_mask = (seq_len % t_blk) != 0                  # static (trace-time) decision

    def step(i, carry):
        h, c = carry
        x = xproj_ref[i]                                 # (B, 4H)
        gates = x + jnp.dot(h, whh, preferred_element_type=jnp.float32)
        # Gate layout is (i, f, o, g): one sigmoid over 3H lanes, one tanh over H lanes.
        sig = jax.nn.sigmoid(gates[:, : 3 * H])
        i_g = sig[:, 0 * H: 1 * H]
        f_g = sig[:, 1 * H: 2 * H]
        o_g = sig[:, 2 * H: 3 * H]
        g_g = jnp.tanh(gates[:, 3 * H: 4 * H])
        c_new = f_g * c + i_g * g_g
        h_new = o_g * jnp.tanh(c_new)
        if needs_mask:
            valid = (g * t_blk + i) < seq_len            # freeze state on padded steps
            h_new = jnp.where(valid, h_new, h)
            c_new = jnp.where(valid, c_new, c)
        out_ref[i] = h_new                               # row i of the (T_BLK, B, H) slab
        return (h_new, c_new)

    h_fin, c_fin = lax.fori_loop(0, t_blk, step, (h_sc[...], c_sc[...]), unroll=True)

    h_sc[...] = h_fin
    c_sc[...] = c_fin
    hn_ref[...] = h_fin                                  # written every block (cheap, robust)
    cn_ref[...] = c_fin


def encoder_rnn_sequence(tokens, hidden, params, *, t_blk=32):
    """Run the LSTM over token sequence(s) in one pallas_call.

    tokens: (T,) or (B, T) int32 token ids
    hidden: (h0, c0) each (1, B, H) float32   (B=1 for the single-sequence case)
    returns: (outputs (T, B, H), (h_n (1, B, H), c_n (1, B, H)))
    """
    emb_table, w_ih, w_hh, b_ih, b_hh = params
    H = emb_table.shape[1]

    tok = jnp.asarray(tokens, jnp.int32)
    if tok.ndim == 1:
        tok = tok[None, :]
    B, T = tok.shape

    h0, c0 = hidden
    h0 = jnp.asarray(h0, jnp.float32).reshape(B, H)
    c0 = jnp.asarray(c0, jnp.float32).reshape(B, H)

    # Reorder gate blocks (i,f,g,o) -> (i,f,o,g) once, in the wrapper.
    w_ih_r = _reorder_ifgo_to_ifog(w_ih).astype(jnp.float32)          # (4H, H)
    w_hh_r = _reorder_ifgo_to_ifog(w_hh).astype(jnp.float32)          # (4H, H)
    bias_r = _reorder_ifgo_to_ifog((b_ih + b_hh).astype(jnp.float32)) # (4H,)

    # Precompute the input projection as ONE large matmul (embedding gather +
    # x @ W_ih^T + bias) outside the kernel; the kernel only does h @ W_hh^T.
    emb = emb_table.astype(jnp.float32)[tok]                          # (B, T, H)
    x_proj = jnp.einsum('bth,gh->tbg', emb, w_ih_r,
                        precision=lax.Precision.HIGHEST) + bias_r     # (T, B, 4H)

    # Block the time axis; pad x_proj to a multiple of t_blk (padded steps are
    # masked inside the kernel so the carried state is unaffected).
    t_blk = max(1, min(t_blk, T))
    n_blk = pl.cdiv(T, t_blk)
    T_pad = n_blk * t_blk
    if T_pad != T:
        x_proj = jnp.pad(x_proj, ((0, T_pad - T), (0, 0), (0, 0)))

    whh_t = w_hh_r.T                                                  # (H, 4H), VMEM-resident

    kernel = functools.partial(_lstm_block_kernel, t_blk=t_blk, seq_len=T, hidden=H)

    out, h_n, c_n = pl.pallas_call(
        kernel,
        out_shape=(
            jax.ShapeDtypeStruct((T_pad, B, H), jnp.float32),   # per-step hidden outputs
            jax.ShapeDtypeStruct((B, H), jnp.float32),          # h_n
            jax.ShapeDtypeStruct((B, H), jnp.float32),          # c_n
        ),
        grid_spec=pltpu.PrefetchScalarGridSpec(
            num_scalar_prefetch=0,
            grid=(n_blk,),
            in_specs=[
                pl.BlockSpec((t_blk, B, 4 * H), lambda g: (g, 0, 0)),   # x_proj slab
                pl.BlockSpec((B, H), lambda g: (0, 0)),                 # h0 (read at g==0)
                pl.BlockSpec((B, H), lambda g: (0, 0)),                 # c0 (read at g==0)
                pl.BlockSpec((H, 4 * H), lambda g: (0, 0)),             # W_hh^T (resident)
            ],
            out_specs=[
                pl.BlockSpec((t_blk, B, H), lambda g: (g, 0, 0)),       # output slab g
                pl.BlockSpec((B, H), lambda g: (0, 0)),                 # h_n
                pl.BlockSpec((B, H), lambda g: (0, 0)),                 # c_n
            ],
            scratch_shapes=[
                pltpu.VMEM((B, H), jnp.float32),   # h carry
                pltpu.VMEM((B, H), jnp.float32),   # c carry
            ],
        ),
        compiler_params=pltpu.CompilerParams(
            dimension_semantics=("arbitrary",)),   # recurrence -> sequential grid axis
    )(x_proj, h0, c0, whh_t)

    outputs = out[:T]                              # drop padded rows
    return outputs, (h_n[None], c_n[None])


def encoder_rnn_forward(token_id, hidden, params):
    """Mirrors EncoderRNN.forward(input, hidden): single token, single step.

    token_id: int scalar (token index)
    hidden:   (h0, c0) each (1, 1, H)
    returns:  (output (1, 1, H), (h_n (1, 1, H), c_n (1, 1, H)))
    """
    H = params[0].shape[1]
    tokens = jnp.asarray(token_id, jnp.int32).reshape(1, 1)   # (B=1, T=1)
    out, (h_n, c_n) = encoder_rnn_sequence(tokens, hidden, params)
    return out.reshape(1, 1, H), (h_n.reshape(1, 1, H), c_n.reshape(1, 1, H))


def init_params(key, input_size, hidden_size):
    """Deterministic synthetic params matching nn.Embedding + nn.LSTM shapes."""
    k_emb, k_wih, k_whh, k_bih, k_bhh = jax.random.split(key, 5)
    H = hidden_size
    emb_table = jax.random.normal(k_emb, (input_size, H), jnp.float32)
    scale = 1.0 / jnp.sqrt(H)
    w_ih = scale * jax.random.normal(k_wih, (4 * H, H), jnp.float32)
    w_hh = scale * jax.random.normal(k_whh, (4 * H, H), jnp.float32)
    b_ih = scale * jax.random.normal(k_bih, (4 * H,), jnp.float32)
    b_hh = scale * jax.random.normal(k_bhh, (4 * H,), jnp.float32)
    return emb_table, w_ih, w_hh, b_ih, b_hh


def init_hidden(hidden_size, batch=1):
    return (jnp.zeros((1, batch, hidden_size), jnp.float32),
            jnp.zeros((1, batch, hidden_size), jnp.float32))


def _reference_step(token_id, h, c, params):
    """Pure-JAX reference of one torch.nn.LSTM step (gate order i, f, g, o)."""
    emb_table, w_ih, w_hh, b_ih, b_hh = params
    H = emb_table.shape[1]
    x = emb_table[token_id].reshape(1, H)
    gates = (jnp.dot(x, w_ih.T, precision=lax.Precision.HIGHEST)
             + jnp.dot(h, w_hh.T, precision=lax.Precision.HIGHEST)
             + (b_ih + b_hh).reshape(1, 4 * H))
    i_g = jax.nn.sigmoid(gates[:, 0 * H:1 * H])
    f_g = jax.nn.sigmoid(gates[:, 1 * H:2 * H])
    g_g = jnp.tanh(gates[:, 2 * H:3 * H])
    o_g = jax.nn.sigmoid(gates[:, 3 * H:4 * H])
    c_new = f_g * c + i_g * g_g
    h_new = o_g * jnp.tanh(c_new)
    return h_new, c_new


if __name__ == "__main__":
    input_size = 64     # vocab size
    hidden_size = 32    # 4H = 128 -> gate axis fills one lane tile
    seq_len = 8

    key = jax.random.PRNGKey(0)
    params = init_params(key, input_size, hidden_size)

    # --- single-token forward, matching EncoderRNN.forward semantics -------
    token = jnp.array(7, dtype=jnp.int32)
    output, (h_n, c_n) = encoder_rnn_forward(token, init_hidden(hidden_size), params)
    jax.block_until_ready((output, h_n, c_n))

    assert output.shape == (1, 1, hidden_size)
    assert h_n.shape == (1, 1, hidden_size)
    assert c_n.shape == (1, 1, hidden_size)

    h_ref, c_ref = _reference_step(int(token), jnp.zeros((1, hidden_size)),
                                   jnp.zeros((1, hidden_size)), params)
    assert bool(jnp.allclose(output.reshape(1, hidden_size), h_ref, atol=1e-3, rtol=1e-3))
    assert bool(jnp.allclose(h_n.reshape(1, hidden_size), h_ref, atol=1e-3, rtol=1e-3))
    assert bool(jnp.allclose(c_n.reshape(1, hidden_size), c_ref, atol=1e-3, rtol=1e-3))

    # --- single sequence: one pallas_call, W_hh^T stays VMEM-resident ------
    tokens = jax.random.randint(jax.random.PRNGKey(1), (seq_len,), 0,
                                input_size, dtype=jnp.int32)
    outs, (h_T, c_T) = encoder_rnn_sequence(tokens, init_hidden(hidden_size), params)
    jax.block_until_ready((outs, h_T, c_T))
    assert outs.shape == (seq_len, 1, hidden_size)

    h_r = jnp.zeros((1, hidden_size), jnp.float32)
    c_r = jnp.zeros((1, hidden_size), jnp.float32)
    for t in range(seq_len):
        h_r, c_r = _reference_step(int(tokens[t]), h_r, c_r, params)
        assert bool(jnp.allclose(outs[t], h_r, atol=1e-3, rtol=1e-3))
    assert bool(jnp.allclose(h_T[0], h_r, atol=1e-3, rtol=1e-3))
    assert bool(jnp.allclose(c_T[0], c_r, atol=1e-3, rtol=1e-3))

    # --- batched sequences, T not a multiple of T_BLK (exercises masking
    #     and multi-block grid); nonzero initial hidden exercises the init.
    Bt, T2, blk = 4, 10, 4
    tok_bt = jax.random.randint(jax.random.PRNGKey(2), (Bt, T2), 0,
                                input_size, dtype=jnp.int32)
    h0_b = 0.1 * jax.random.normal(jax.random.PRNGKey(3), (1, Bt, hidden_size), jnp.float32)
    c0_b = 0.1 * jax.random.normal(jax.random.PRNGKey(4), (1, Bt, hidden_size), jnp.float32)
    outs_bt, (h_nb, c_nb) = encoder_rnn_sequence(tok_bt, (h0_b, c0_b), params, t_blk=blk)
    jax.block_until_ready((outs_bt, h_nb, c_nb))
    assert outs_bt.shape == (T2, Bt, hidden_size)

    for b in range(Bt):
        h_r = h0_b[0, b:b + 1]
        c_r = c0_b[0, b:b + 1]
        for t in range(T2):
            h_r, c_r = _reference_step(int(tok_bt[b, t]), h_r, c_r, params)
            assert bool(jnp.allclose(outs_bt[t, b:b + 1], h_r, atol=1e-3, rtol=1e-3))
        assert bool(jnp.allclose(h_nb[0, b:b + 1], h_r, atol=1e-3, rtol=1e-3))
        assert bool(jnp.allclose(c_nb[0, b:b + 1], c_r, atol=1e-3, rtol=1e-3))

    print("KERNEL_OK")
</pallas_src>

<mosaic_0001>
module attributes {stable_mosaic.version = 11 : i64} {
  func.func @_lstm_block_kernel(%arg0: i32, %arg1: memref<1x1x128xf32, #tpu.memory_space<vmem>>, %arg2: memref<1x32xf32, #tpu.memory_space<vmem>>, %arg3: memref<1x32xf32, #tpu.memory_space<vmem>>, %arg4: memref<32x128xf32, #tpu.memory_space<vmem>>, %arg5: memref<1x1x32xf32, #tpu.memory_space<vmem>>, %arg6: memref<1x32xf32, #tpu.memory_space<vmem>>, %arg7: memref<1x32xf32, #tpu.memory_space<vmem>>, %arg8: memref<1x32xf32, #tpu.memory_space<vmem>>, %arg9: memref<1x32xf32, #tpu.memory_space<vmem>>) attributes {dimension_semantics = [#tpu.dimension_semantics<arbitrary>], iteration_bounds = array<i64: 1>, scalar_prefetch = 0 : i64, scratch_operands = 2 : i64, tpu.core_type = #tpu.core_type<tc>, window_params = [{transform_indices = @transform_0, window_bounds = array<i64: 1, 1, 128>}, {pipeline_mode = #tpu.pipeline_mode<synchronous>, transform_indices = @transform_1, window_bounds = array<i64: 1, 32>}, {pipeline_mode = #tpu.pipeline_mode<synchronous>, transform_indices = @transform_2, window_bounds = array<i64: 1, 32>}, {pipeline_mode = #tpu.pipeline_mode<synchronous>, transform_indices = @transform_3, window_bounds = array<i64: 32, 128>}, {transform_indices = @transform_4, window_bounds = array<i64: 1, 1, 32>}, {pipeline_mode = #tpu.pipeline_mode<synchronous>, transform_indices = @transform_5, window_bounds = array<i64: 1, 32>}, {pipeline_mode = #tpu.pipeline_mode<synchronous>, transform_indices = @transform_6, window_bounds = array<i64: 1, 32>}]} {
    %c0_i32 = arith.constant 0 : i32
    %0 = arith.cmpi eq, %arg0, %c0_i32 : i32
    %1 = arith.extui %0 : i1 to i32
    %c0_i32_0 = arith.constant 0 : i32
    %2 = arith.cmpi ne, %1, %c0_i32_0 : i32
    scf.if %2 {
      %c0_20 = arith.constant 0 : index
      %c0_21 = arith.constant 0 : index
      %35 = vector.load %arg2[%c0_20, %c0_21] : memref<1x32xf32, #tpu.memory_space<vmem>>, vector<1x32xf32>
      %c0_22 = arith.constant 0 : index
      %c0_23 = arith.constant 0 : index
      %36 = vector.load %arg8[%c0_22, %c0_23] : memref<1x32xf32, #tpu.memory_space<vmem>>, vector<1x32xf32>
      tpu.vector_store %arg8[%c0_22, %c0_23], %35 {strides = array<i32>} : memref<1x32xf32, #tpu.memory_space<vmem>>, vector<1x32xf32>,
      %c0_24 = arith.constant 0 : index
      %c0_25 = arith.constant 0 : index
      %37 = vector.load %arg3[%c0_24, %c0_25] : memref<1x32xf32, #tpu.memory_space<vmem>>, vector<1x32xf32>
      %c0_26 = arith.constant 0 : index
      %c0_27 = arith.constant 0 : index
      %38 = vector.load %arg9[%c0_26, %c0_27] : memref<1x32xf32, #tpu.memory_space<vmem>>, vector<1x32xf32>
      tpu.vector_store %arg9[%c0_26, %c0_27], %37 {strides = array<i32>} : memref<1x32xf32, #tpu.memory_space<vmem>>, vector<1x32xf32>,
    } else {
    }
    %c0 = arith.constant 0 : index
    %c0_1 = arith.constant 0 : index
    %3 = vector.load %arg4[%c0, %c0_1] : memref<32x128xf32, #tpu.memory_space<vmem>>, vector<32x128xf32>
    %c0_2 = arith.constant 0 : index
    %c0_3 = arith.constant 0 : index
    %4 = vector.load %arg8[%c0_2, %c0_3] : memref<1x32xf32, #tpu.memory_space<vmem>>, vector<1x32xf32>
    %c0_4 = arith.constant 0 : index
    %c0_5 = arith.constant 0 : index
    %5 = vector.load %arg9[%c0_4, %c0_5] : memref<1x32xf32, #tpu.memory_space<vmem>>, vector<1x32xf32>
    %c0_i32_6 = arith.constant 0 : i32
    %6 = arith.index_cast %c0_i32_6 : i32 to index
    %c0_7 = arith.constant 0 : index
    %c0_8 = arith.constant 0 : index
    %7 = vector.load %arg1[%6, %c0_7, %c0_8] : memref<1x1x128xf32, #tpu.memory_space<vmem>>, vector<1x1x128xf32>
    %8 = vector.shape_cast %7 : vector<1x1x128xf32> to vector<1x128xf32>
    %cst = arith.constant dense<0.000000e+00> : vector<1x128xf32>
    %9 = tpu.matmul %4, %3, %cst {dimension_numbers = #tpu.dot_dimension_numbers<[1], [0], [0], [1], [0, 0, 1, 1], [], []>} : vector<1x32xf32>, vector<32x128xf32>, vector<1x128xf32> -> vector<1x128xf32>
    %10 = arith.addf %8, %9 : vector<1x128xf32>
    %11 = vector.extract_strided_slice %10 {offsets = [0, 0], sizes = [1, 96], strides = [1, 1]} : vector<1x128xf32> to vector<1x96xf32>
    %12 = arith.negf %11 : vector<1x96xf32>
    %13 = math.exp %12 : vector<1x96xf32>
    %cst_9 = arith.constant 1.000000e+00 : f32
    %14 = vector.broadcast %cst_9 : f32 to vector<1x96xf32>
    %15 = arith.addf %14, %13 : vector<1x96xf32>
    %16 = arith.divf %14, %15 : vector<1x96xf32>
    %17 = vector.extract_strided_slice %16 {offsets = [0, 0], sizes = [1, 32], strides = [1, 1]} : vector<1x96xf32> to vector<1x32xf32>
    %18 = vector.extract_strided_slice %16 {offsets = [0, 32], sizes = [1, 32], strides = [1, 1]} : vector<1x96xf32> to vector<1x32xf32>
    %19 = vector.extract_strided_slice %16 {offsets = [0, 64], sizes = [1, 32], strides = [1, 1]} : vector<1x96xf32> to vector<1x32xf32>
    %20 = vector.extract_strided_slice %10 {offsets = [0, 96], sizes = [1, 32], strides = [1, 1]} : vector<1x128xf32> to vector<1x32xf32>
    %21 = math.tanh %20 : vector<1x32xf32>
    %22 = arith.mulf %18, %5 : vector<1x32xf32>
    %23 = arith.mulf %17, %21 : vector<1x32xf32>
    %24 = arith.addf %22, %23 : vector<1x32xf32>
    %25 = math.tanh %24 : vector<1x32xf32>
    %26 = arith.mulf %19, %25 : vector<1x32xf32>
    %27 = arith.index_cast %c0_i32_6 : i32 to index
    %c0_10 = arith.constant 0 : index
    %c0_11 = arith.constant 0 : index
    %28 = vector.load %arg5[%27, %c0_10, %c0_11] : memref<1x1x32xf32, #tpu.memory_space<vmem>>, vector<1x1x32xf32>
    %29 = vector.shape_cast %28 : vector<1x1x32xf32> to vector<1x32xf32>
    %30 = vector.shape_cast %26 : vector<1x32xf32> to vector<1x1x32xf32>
    tpu.vector_store %arg5[%27, %c0_10, %c0_11], %30 {strides = array<i32>} : memref<1x1x32xf32, #tpu.memory_space<vmem>>, vector<1x1x32xf32>,
    %c1_i32 = arith.constant 1 : i32
    %c0_12 = arith.constant 0 : index
    %c0_13 = arith.constant 0 : index
    %31 = vector.load %arg8[%c0_12, %c0_13] : memref<1x32xf32, #tpu.memory_space<vmem>>, vector<1x32xf32>
    tpu.vector_store %arg8[%c0_12, %c0_13], %26 {strides = array<i32>} : memref<1x32xf32, #tpu.memory_space<vmem>>, vector<1x32xf32>,
    %c0_14 = arith.constant 0 : index
    %c0_15 = arith.constant 0 : index
    %32 = vector.load %arg9[%c0_14, %c0_15] : memref<1x32xf32, #tpu.memory_space<vmem>>, vector<1x32xf32>
    tpu.vector_store %arg9[%c0_14, %c0_15], %24 {strides = array<i32>} : memref<1x32xf32, #tpu.memory_space<vmem>>, vector<1x32xf32>,
    %c0_16 = arith.constant 0 : index
    %c0_17 = arith.constant 0 : index
    %33 = vector.load %arg6[%c0_16, %c0_17] : memref<1x32xf32, #tpu.memory_space<vmem>>, vector<1x32xf32>
    tpu.vector_store %arg6[%c0_16, %c0_17], %26 {strides = array<i32>} : memref<1x32xf32, #tpu.memory_space<vmem>>, vector<1x32xf32>,
    %c0_18 = arith.constant 0 : index
    %c0_19 = arith.constant 0 : index
    %34 = vector.load %arg7[%c0_18, %c0_19] : memref<1x32xf32, #tpu.memory_space<vmem>>, vector<1x32xf32>
    tpu.vector_store %arg7[%c0_18, %c0_19], %24 {strides = array<i32>} : memref<1x32xf32, #tpu.memory_space<vmem>>, vector<1x32xf32>,
    return
  }
  func.func @transform_0(%arg0: i32) -> (i32, i32, i32) {
    %c0_i32 = arith.constant 0 : i32
    %c0_i32_0 = arith.constant 0 : i32
    %c0_i32_1 = arith.constant 0 : i32
    return %arg0, %c0_i32, %c0_i32_0 : i32, i32, i32
  }
  func.func @transform_1(%arg0: i32) -> (i32, i32) {
    %c0_i32 = arith.constant 0 : i32
    %c0_i32_0 = arith.constant 0 : i32
    %c0_i32_1 = arith.constant 0 : i32
    return %c0_i32, %c0_i32_0 : i32, i32
  }
  func.func @transform_2(%arg0: i32) -> (i32, i32) {
    %c0_i32 = arith.constant 0 : i32
    %c0_i32_0 = arith.constant 0 : i32
    %c0_i32_1 = arith.constant 0 : i32
    return %c0_i32, %c0_i32_0 : i32, i32
  }
  func.func @transform_3(%arg0: i32) -> (i32, i32) {
    %c0_i32 = arith.constant 0 : i32
    %c0_i32_0 = arith.constant 0 : i32
    %c0_i32_1 = arith.constant 0 : i32
    return %c0_i32, %c0_i32_0 : i32, i32
  }
  func.func @transform_4(%arg0: i32) -> (i32, i32, i32) {
    %c0_i32 = arith.constant 0 : i32
    %c0_i32_0 = arith.constant 0 : i32
    %c0_i32_1 = arith.constant 0 : i32
    return %arg0, %c0_i32, %c0_i32_0 : i32, i32, i32
  }
  func.func @transform_5(%arg0: i32) -> (i32, i32) {
    %c0_i32 = arith.constant 0 : i32
    %c0_i32_0 = arith.constant 0 : i32
    %c0_i32_1 = arith.constant 0 : i32
    return %c0_i32, %c0_i32_0 : i32, i32
  }
  func.func @transform_6(%arg0: i32) -> (i32, i32) {
    %c0_i32 = arith.constant 0 : i32
    %c0_i32_0 = arith.constant 0 : i32
    %c0_i32_1 = arith.constant 0 : i32
    return %c0_i32, %c0_i32_0 : i32, i32
  }
}

</mosaic_0001>

<bundles_post_ra>
// kernel: tpu_custom_call.1
= control target key start
LH: loop header
LB: loop body
LE: loop exit
PB: predicated region body
PF: predicated region fallthrough
CT: control target
= control target key end

     0   :  { %12 = vsyncpa [#allocation5], 0  ;;  %s539_s0 = inlined_call_operand.hbm [shape: f32[1,1,128], index: 0, kind: input, shape index: {}]   ;;  %s540_s1 = inlined_call_operand.vmem [shape: f32[1,32], index: 1, kind: input, shape index: {}]   ;;  %s541_s2 = inlined_call_operand.vmem [shape: f32[1,32], index: 2, kind: input, shape index: {}]   ;;  %s542_s3 = inlined_call_operand.hbm [shape: f32[32,128], index: 3, kind: input, shape index: {}]   ;;  %s543_s4 = inlined_call_operand.hbm [shape: f32[1,1,32], index: 4, kind: output, shape index: {0}]   ;;  %s544_s5 = inlined_call_operand.hbm [shape: f32[1,32], index: 5, kind: output, shape index: {1}]   ;;  %s545_s6 = inlined_call_operand.hbm [shape: f32[1,32], index: 6, kind: output, shape index: {2}]  }
   0x1   :  { %13 = vsyncpa [#allocation8], 0 }
   0x2   :  { %14 = vsyncpa [#allocation6], 0 }
   0x3   :  { %15 = vsyncpa [#allocation11], 0  ;;  %s395_s21 = smov [#allocation4]   ;;  %s396_s23 = smov [#allocation7]  }
   0x4   :  { %s22_s22 = sshll.u32 %s395_s21, 4  ;;  %s35_s24 = sshll.u32 %s396_s23, 4  ;;  %s23_s22 = int_to_ptr.vmem [resolvable:$true] %s22_s22  ;;  %s443_s24 = int_to_ptr.vmem [resolvable:$true] %s35_s24 }
   0x5   :  { %s277_s27 = scalar_lea.hbm %s539_s0, 16 }
   0x6   :  { %p278_p0 = scmp.ne.s32.totalorder %s539_s0, %s277_s27  ;;  %p281_p1 = scmp.lt.u32.totalorder %s277_s27, %s539_s0 }
   0x8   :  { %p283_p2 = pnand %p281_p1, %p278_p0 }
   0xa   :  { %286 = shalt.err (!%p283_p2)
}
   0xb   :  { %s287_s8 = scalar_lea.vmem %s23_s22, 16  ;;  %s291_s9 = scalar_lea.vmem %s23_s22, 32 }
   0xc   :  { %p288_p3 = scmp.ne.s32.totalorder %s23_s22, %s287_s8  ;;  %p292_p4 = scmp.lt.s32.totalorder %s23_s22, %s23_s22 }
   0xd   :  { %p293_p5 = scmp.lt.s32.totalorder %s291_s9, %s287_s8 }
   0xf   :  { %p294_p6 = por %p293_p5, %p292_p4 }
  0x11   :  { %p295_p7 = pnand %p294_p6, %p288_p3 }
  0x13   :  { %298 = shalt.err (!%p295_p7)
}
  0x14   :  { %25 = dma.hbm_to_vmem [thread:$0]  %s539_s0, 16, %s23_s22, [#allocation5]  }
  0x15   :  { %s299_s14 = scalar_lea.hbm %s542_s3, 512 }
  0x16   :  { %p300_p8 = scmp.ne.s32.totalorder %s542_s3, %s299_s14  ;;  %p303_p9 = scmp.lt.u32.totalorder %s299_s14, %s542_s3 }
  0x18   :  { %p305_p10 = pnand %p303_p9, %p300_p8 }
  0x1a   :  { %308 = shalt.err (!%p305_p10)
}
  0x1b   :  { %s309_s19 = scalar_lea.vmem %s443_s24, 512  ;;  %p314_p12 = scmp.lt.s32.totalorder %s443_s24, %s443_s24 }
  0x1c   :  { %p310_p11 = scmp.ne.s32.totalorder %s443_s24, %s309_s19  ;;  %p315_p13 = scmp.lt.s32.totalorder %s309_s19, %s309_s19 }
  0x1e   :  { %p316_p0 = por %p315_p13, %p314_p12 }
  0x20   :  { %p317_p1 = pnand %p316_p0, %p310_p11 }
  0x22   :  { %320 = shalt.err (!%p317_p1)
}
  0x23   :  { %s397_s0 = smov 128   ;;  %s398_s20 = smov 8  }
  0x24   :  { %41 = dma.hbm_to_vmem [thread:$0]  %s542_s3, 512, %s443_s24, [#allocation8], %s397_s0, %s397_s0, %s398_s20  }
  0x25   :  { %387 = dma.done.wait [#allocation5], 16  }
  0x26   :  { %388 = vsyncadd [#allocation5], 4294967280 }
  0x27   :  { %389 = dma.done.wait [#allocation8], 512  }
  0x28   :  { %390 = vsyncadd [#allocation8], 4294966784  ;;  %v399_v0 = vmov 0.0|0.0   ;;  %vm400_vm0 = vmmov 0   ;;  %v401_v1 = vmov 0.0   ;;  %vm53_vm1 = vcmask 253952  }
  0x29   :  { %250 = vmatprep.subr.bf16.mxu0 %v399_v0  ;;  %247 = vmatprep.mubr.msk.f32.mxu0 %vm400_vm0, %v401_v1  ;;  %v57_v2 = vld [vmem:[#allocation7] sm:$0xff]  ;;  %v58_v3 = vld [vmem:[#allocation7 + $0x8] sm:$0xff]  ;;  %v59_v4 = vld [vmem:[#allocation7 + $0x10] sm:$0xff]  ;;  %vm64_vm2 = vcmask 261120   ;;  %v168_v27 = vlaneseq  ;;  %s404_s26 = smov 64   ;;  %s405_s27 = smov [#allocation10]  }
  0x2a   :  { %v251_v5 = vpack.c.bf16 %v58_v3, %v57_v2  ;;  %v60_v6 = vld [vmem:[#allocation7 + $0x18] sm:$0xff]  ;;  %s205_s28 = sshll.u32 %s405_s27, 4  ;;  %s406_s29 = smov [#allocation9]   ;;  %s206_s28 = int_to_ptr.vmem [resolvable:$true] %s205_s28 }
  0x2b   :  { %v52_v7 = vld [vmem:[%s540_s1] sm:$0x1]  ;;  %v254_v8 = vpack.c.bf16 %v60_v6, %v59_v4  ;;  %v63_v11 = vld [vmem:[#allocation4] sm:$0x1]  ;;  %s402_s1 = smov 32   ;;  %v169_v28 = vshrl.u32 %v168_v27, 7  ;;  %p326_p3 = scmp.lt.s32.totalorder %s206_s28, %s206_s28 }
  0x2c   :  { %54 = vst.msk [vmem:[#allocation2] sm:$0x1] %vm53_vm1, %v52_v7  ;;  %252 = vmatpush3.bf16.msra.mxu0 %v251_v5  ;;  %v55_v10 = vld [vmem:[%s541_s2] sm:$0x1]  ;;  %s403_s2 = smov 96   ;;  %s195_s30 = sshll.u32 %s406_s29, 4  ;;  %s484_s30 = int_to_ptr.vmem [resolvable:$true] %s195_s30 }
  0x2d   :  { %253 = vmatprep.subr.bf16.mxu0 %v399_v0  ;;  %56 = vst.msk [vmem:[#allocation3] sm:$0x1] %vm53_vm1, %v55_v10  ;;  %v170_v29 = vsub.s32 0, %v169_v28  ;;  %s407_s7 = smov [#allocation12]   ;;  %s321_s9 = scalar_lea.vmem %s206_s28, 16 }
  0x2e   :  { %s215_s8 = sshll.u32 %s407_s7, 4  ;;  %p322_p2 = scmp.ne.s32.totalorder %s206_s28, %s321_s9  ;;  %s489_s8 = int_to_ptr.vmem [resolvable:$true] %s215_s8 }
  0x2f   :  { %s325_s10 = scalar_lea.vmem %s206_s28, 32 }
  0x30   :  { %255 = vmatpush3.bf16.msra.mxu0 %v254_v8  ;;  %p327_p4 = scmp.lt.s32.totalorder %s325_s10, %s321_s9 }
  0x32   :  { %p328_p5 = por %p327_p4, %p326_p3 }
  0x33   :  { %v61_v9 = vld [vmem:[#allocation2] sm:$0x1] }
  0x34   :  { %248 = vmatmul.mubr.msk.f32.vlgmr.msra.gmra.mrb[0].mxu0 %vm64_vm2, %v61_v9  ;;  %v62_v16 = vld [vmem:[#allocation3] sm:$0x1]  ;;  %p329_p6 = pnand %p328_p5, %p322_p2 }
 0x107   :  { %v134_v12 = vpop.f32.mrb[0].mxu0 }
 0x108   :  { %v138_v13 = vadd.f32 %v134_v12, %v63_v11  ;;  %v249_v14 = vpop.f32.mrb[1].mxu0 }
 0x10a   :  { %269 = vtanh.f32 %v138_v13  ;;  %v233_v17 = vmul.f32 -1.442695, %v138_v13 }
 0x10c   :  { %271 = vpow2.f32 %v233_v17 }
 0x114   :  { %v270_v15 = vpop.eup %269 }
 0x115   :  { %152 = vrot.lane.b32.xlu0 %v270_v15, %s402_s1 }
 0x116   :  { %v272_v18 = vpop.eup %271 }
 0x117   :  { %v142_v19 = vadd.f32 1.0, %v272_v18 }
 0x119   :  { %147 = vrot.lane.b32.xlu0 %v62_v16, %s402_s1  ;;  %273 = vrcp.f32 %v142_v19 }
 0x123   :  { %v274_v20 = vpop.eup %273 }
 0x187   :  { %v153_v21 = vpop.permute.xlu0 %152 }
 0x188   :  { %v155_v22 = vmul.f32 %v274_v20, %v153_v21 }
 0x18a   :  { %157 = vrot.lane.b32.xlu1 %v155_v22, %s402_s1 }
 0x18b   :  { %v148_v23 = vpop.permute.xlu0 %147 }
 0x18c   :  { %v150_v24 = vmul.f32 %v274_v20, %v148_v23 }
 0x1fc   :  { %v158_v25 = vpop.permute.xlu1 %157 }
 0x1fd   :  { %v160_v26 = vadd.f32 %v158_v25, %v150_v24 }
 0x1ff   :  { %275 = vtanh.f32 %v160_v26  ;;  %v182_v31 = vrot.slane %v160_v26, %v170_v29 }
 0x209   :  { %v276_v30 = vpop.eup %275 }
 0x20a   :  { %163 = vrot.lane.b32.xlu1 %v276_v30, %s402_s1 }
 0x20e   :  { %183 = vrot.lane.b32.xlu1 %v182_v31, %s403_s2 }
 0x27c   :  { %v164_v32 = vpop.permute.xlu1 %163 }
 0x27d   :  { %v166_v33 = vmul.f32 %v274_v20, %v164_v32 }
 0x27f   :  { %v171_v34 = vrot.slane %v166_v33, %v170_v29 }
 0x280   :  { %v184_v35 = vpop.permute.xlu1 %183 }
 0x281   :  { %186 = vst.msk [vmem:[#allocation3] sm:$0x1] %vm53_vm1, %v184_v35  ;;  %188 = vst.msk [vmem:[#allocation12] sm:$0x1] %vm53_vm1, %v184_v35  ;;  %172 = vrot.lane.b32.xlu0 %v171_v34, %s404_s26 }
 0x2f3   :  { %v173_v36 = vpop.permute.xlu0 %172 }
 0x2f4   :  { %177 = vst.msk [vmem:[#allocation2] sm:$0x1] %vm53_vm1, %v173_v36  ;;  %176 = vst.msk [vmem:[#allocation9] sm:$0x1] %vm53_vm1, %v173_v36 }
 0x2f5   :  { %187 = vst.msk [vmem:[#allocation10] sm:$0x1] %vm53_vm1, %v173_v36 }
 0x2f6   :  { %332 = shalt.err (!%p329_p6)
}
 0x2f7   :  { %s333_s13 = scalar_lea.hbm %s544_s5, 16 }
 0x2f8   :  { %p334_p7 = scmp.ne.s32.totalorder %s544_s5, %s333_s13  ;;  %p337_p8 = scmp.lt.u32.totalorder %s333_s13, %s544_s5 }
 0x2fa   :  { %p339_p9 = pnand %p337_p8, %p334_p7 }
 0x2fc   :  { %342 = shalt.err (!%p339_p9)
}
 0x2fd   :  { %208 = dma.vmem_to_hbm [thread:$0]  %s206_s28, 16, %s544_s5, [#allocation11]  }
 0x2fe   :  { %s343_s0 = scalar_lea.vmem %s484_s30, 16  ;;  %s347_s20 = scalar_lea.vmem %s484_s30, 32 }
 0x2ff   :  { %p344_p10 = scmp.ne.s32.totalorder %s484_s30, %s343_s0  ;;  %p348_p11 = scmp.lt.s32.totalorder %s484_s30, %s484_s30 }
 0x300   :  { %p349_p12 = scmp.lt.s32.totalorder %s347_s20, %s343_s0 }
 0x302   :  { %p350_p13 = por %p349_p12, %p348_p11 }
 0x304   :  { %p351_p0 = pnand %p350_p13, %p344_p10 }
 0x306   :  { %354 = shalt.err (!%p351_p0)
}
 0x307   :  { %s355_s23 = scalar_lea.hbm %s543_s4, 16 }
 0x308   :  { %p356_p1 = scmp.ne.s32.totalorder %s543_s4, %s355_s23  ;;  %p359_p2 = scmp.lt.u32.totalorder %s355_s23, %s543_s4 }
 0x30a   :  { %p361_p3 = pnand %p359_p2, %p356_p1 }
 0x30c   :  { %364 = shalt.err (!%p361_p3)
}
 0x30d   :  { %198 = dma.vmem_to_hbm [thread:$0]  %s484_s30, 16, %s543_s4, [#allocation6]  }
 0x30e   :  { %s365_s26 = scalar_lea.vmem %s489_s8, 16  ;;  %s369_s27 = scalar_lea.vmem %s489_s8, 32 }
 0x30f   :  { %p366_p4 = scmp.ne.s32.totalorder %s489_s8, %s365_s26  ;;  %p370_p5 = scmp.lt.s32.totalorder %s489_s8, %s489_s8 }
 0x310   :  { %p371_p6 = scmp.lt.s32.totalorder %s369_s27, %s365_s26 }
 0x312   :  { %p372_p7 = por %p371_p6, %p370_p5 }
 0x314   :  { %p373_p8 = pnand %p372_p7, %p366_p4 }
 0x316   :  { %376 = shalt.err (!%p373_p8)
}
 0x317   :  { %s377_s7 = scalar_lea.hbm %s545_s6, 16 }
 0x318   :  { %p378_p9 = scmp.ne.s32.totalorder %s545_s6, %s377_s7  ;;  %p381_p10 = scmp.lt.u32.totalorder %s377_s7, %s545_s6 }
 0x31a   :  { %p383_p11 = pnand %p381_p10, %p378_p9 }
 0x31c   :  { %386 = shalt.err (!%p383_p11)
}
 0x31d   :  { %218 = dma.vmem_to_hbm [thread:$0]  %s489_s8, 16, %s545_s6, [#allocation11]  }
 0x31e   :  { %391 = dma.done.wait [#allocation6], 16  }
 0x31f   :  { %392 = vsyncadd [#allocation6], 4294967280 }
 0x320   :  { %393 = dma.done.wait [#allocation11], 32  }
 0x321   :  { %394 = vsyncadd [#allocation11], 4294967264 }
 0x322   :  { %228 = vsyncpa [#allocation5], 1 }
 0x323   :  { %229 = vsyncpa [#allocation8], 1 }
 0x324   :  { %230 = vsyncpa [#allocation6], 1 }
 0x325   :  { %231 = vsyncpa [#allocation11], 1 }

</bundles_post_ra>
